<compile_context>
chip_gen: v5e
topology: v5e:2x2
jax: 0.10.0
libtpu: 0.0.40
codegen_flags: <defaults>
</compile_context>

<pallas_src>
import functools

import jax
import jax.numpy as jnp
from jax.experimental import pallas as pl
from jax.experimental.pallas import tpu as pltpu


def _concat_kernel(x_ref, o_ref, *, n_rep):
    # x_ref : (1, C, T)          input tile (VMEM)
    # o_ref : (1, n_rep, C, T)   output tile (VMEM), repeat axis leading
    # All sub-modules are Identity, so the only "compute" is the fan-out copy
    # that realizes Concatenate(dim=1).  Read x_ref inside the loop (no hoisted
    # whole-tile live value).
    for r in range(n_rep):                 # static unroll (n_rep is small)
        o_ref[:, r, :, :] = x_ref[...]


def _vmem_capacity_bytes():
    """Physical VMEM capacity for this generation, with a safe fallback."""
    try:
        info = pltpu.get_tpu_info()
        cap = getattr(info, "vmem_capacity_bytes", None)
        if cap:
            return int(cap)
    except Exception:  # pragma: no cover - conservative fallback off-TPU
        pass
    # Conservative: v7x has 64 MiB per TC; v5e/v6e have more (128 MiB).
    return 64 * 1024 * 1024


def _pick_lane_tile(hw, c, n_rep, itemsize, budget_bytes):
    """Largest spatial tile whose double-buffered in+out footprint fits."""
    per_lane = 2 * (1 + n_rep) * c * itemsize   # 2 bufs each for in and out
    if per_lane * hw <= budget_bytes:
        return hw                                # full extent (always legal)
    # Largest 128-multiple under budget; keep >= 512 lanes when tiling is
    # forced so per-step DMAs stay in the fat-DMA regime.
    k = max(budget_bytes // (per_lane * 128), 4)
    return int(min(k * 128, hw))


def encoder_decoder_skeleton_forward(x: jax.Array, depth: int) -> jax.Array:
    """Pallas implementation of EncoderDecoderSkeleton(depth).forward(x).

    x: (N, C, H, W)  ->  (N, (depth + 1) * C, H, W)
    """
    N, C, H, W = x.shape
    HW = H * W
    n_rep = depth + 1

    x_flat = x.reshape(N, C, HW)
    itemsize = jnp.dtype(x.dtype).itemsize

    cap = _vmem_capacity_bytes()
    budget_bytes = int(0.70 * cap)
    vmem_limit_bytes = int(0.80 * cap)

    lane_tile = _pick_lane_tile(HW, C, n_rep, itemsize, budget_bytes)
    num_tiles = pl.cdiv(HW, lane_tile)           # ragged last block is fine

    # v7x has 2 TensorCores: never leave one idle with a single-step grid.
    if N * num_tiles < 2 and lane_tile >= 256:
        lane_tile = ((lane_tile // 2 + 127) // 128) * 128
        num_tiles = pl.cdiv(HW, lane_tile)

    kernel = functools.partial(_concat_kernel, n_rep=n_rep)

    in_spec = pl.BlockSpec((1, C, lane_tile), lambda n, t: (n, 0, t))
    out_index_map = lambda n, t: (n, 0, 0, t)
    out_block = (1, n_rep, C, lane_tile)
    out_spec = pl.BlockSpec(out_block, out_index_map)

    # There is zero compute to hide DMA latency behind; if there are many
    # small spatial steps and VMEM headroom, queue one extra output buffer.
    triple_fp = (2 * C + 3 * n_rep * C) * lane_tile * itemsize
    if num_tiles >= 4 and triple_fp <= budget_bytes and hasattr(pl, "Buffered"):
        try:
            out_spec = pl.BlockSpec(out_block, out_index_map,
                                    pipeline_mode=pl.Buffered(3))
        except TypeError:
            pass  # older API without pipeline_mode; keep default 2-deep

    out_4d = pl.pallas_call(
        kernel,
        out_shape=jax.ShapeDtypeStruct((N, n_rep, C, HW), x.dtype),
        grid=(N, num_tiles),
        in_specs=[in_spec],
        out_specs=out_spec,
        compiler_params=pltpu.CompilerParams(
            dimension_semantics=("parallel", "parallel"),
            vmem_limit_bytes=vmem_limit_bytes,
        ),
    )(x_flat)

    return out_4d.reshape(N, n_rep * C, H, W)


def _reference_forward(x: jax.Array, depth: int) -> jax.Array:
    """Pure-JAX reference mirroring the PyTorch forward loop exactly."""
    encoded_states = []
    h = x
    for _ in range(depth):
        h = h                      # encode = Identity
        encoded_states.append(h)
        h = h                      # downsample = Identity
    h = h                          # base = Identity
    for enc in reversed(encoded_states):
        h = h                      # upsample = Identity
        enc = enc                  # skip = Identity
        h = jnp.concatenate([h, enc], axis=1)  # merge = Concatenate(dim=1)
        h = h                      # decode = Identity
    return h                       # final = Identity


if __name__ == "__main__":
    depth = 3
    key = jax.random.PRNGKey(0)
    # small NCHW input consistent with a conv-style UNet skeleton
    x = jax.random.normal(key, (2, 4, 16, 16), dtype=jnp.float32)

    out = encoder_decoder_skeleton_forward(x, depth)
    out = jax.block_until_ready(out)

    ref = _reference_forward(x, depth)
    assert out.shape == ref.shape == (2, (depth + 1) * 4, 16, 16), out.shape
    assert out.dtype == x.dtype
    # pure copy path -> exact equality
    assert bool(jnp.array_equal(out, ref)), "mismatch vs reference"

    print("KERNEL_OK")
</pallas_src>

<mosaic_0001>
module attributes {stable_mosaic.version = 11 : i64} {
  func.func @_concat_kernel(%arg0: i32, %arg1: i32, %arg2: memref<1x4x256xf32, #tpu.memory_space<vmem>>, %arg3: memref<1x4x4x256xf32, #tpu.memory_space<vmem>>) attributes {dimension_semantics = [#tpu.dimension_semantics<parallel>, #tpu.dimension_semantics<parallel>], iteration_bounds = array<i64: 2, 1>, scalar_prefetch = 0 : i64, scratch_operands = 0 : i64, tpu.core_type = #tpu.core_type<tc>, window_params = [{transform_indices = @transform_0, window_bounds = array<i64: 1, 4, 256>}, {transform_indices = @transform_1, window_bounds = array<i64: 1, 4, 4, 256>}]} {
    %c0 = arith.constant 0 : index
    %c0_0 = arith.constant 0 : index
    %c0_1 = arith.constant 0 : index
    %0 = vector.load %arg2[%c0, %c0_0, %c0_1] : memref<1x4x256xf32, #tpu.memory_space<vmem>>, vector<1x4x256xf32>
    %c0_2 = arith.constant 0 : index
    %c0_3 = arith.constant 0 : index
    %c0_4 = arith.constant 0 : index
    %c0_5 = arith.constant 0 : index
    %1 = vector.load %arg3[%c0_2, %c0_3, %c0_4, %c0_5] : memref<1x4x4x256xf32, #tpu.memory_space<vmem>>, vector<1x1x4x256xf32>
    %2 = vector.shape_cast %1 : vector<1x1x4x256xf32> to vector<1x4x256xf32>
    %3 = vector.shape_cast %0 : vector<1x4x256xf32> to vector<1x1x4x256xf32>
    tpu.vector_store %arg3[%c0_2, %c0_3, %c0_4, %c0_5], %3 {strides = array<i32>} : memref<1x4x4x256xf32, #tpu.memory_space<vmem>>, vector<1x1x4x256xf32>,
    %c0_6 = arith.constant 0 : index
    %c0_7 = arith.constant 0 : index
    %c0_8 = arith.constant 0 : index
    %4 = vector.load %arg2[%c0_6, %c0_7, %c0_8] : memref<1x4x256xf32, #tpu.memory_space<vmem>>, vector<1x4x256xf32>
    %c0_9 = arith.constant 0 : index
    %c1 = arith.constant 1 : index
    %c0_10 = arith.constant 0 : index
    %c0_11 = arith.constant 0 : index
    %5 = vector.load %arg3[%c0_9, %c1, %c0_10, %c0_11] : memref<1x4x4x256xf32, #tpu.memory_space<vmem>>, vector<1x1x4x256xf32>
    %6 = vector.shape_cast %5 : vector<1x1x4x256xf32> to vector<1x4x256xf32>
    %7 = vector.shape_cast %4 : vector<1x4x256xf32> to vector<1x1x4x256xf32>
    tpu.vector_store %arg3[%c0_9, %c1, %c0_10, %c0_11], %7 {strides = array<i32>} : memref<1x4x4x256xf32, #tpu.memory_space<vmem>>, vector<1x1x4x256xf32>,
    %c0_12 = arith.constant 0 : index
    %c0_13 = arith.constant 0 : index
    %c0_14 = arith.constant 0 : index
    %8 = vector.load %arg2[%c0_12, %c0_13, %c0_14] : memref<1x4x256xf32, #tpu.memory_space<vmem>>, vector<1x4x256xf32>
    %c0_15 = arith.constant 0 : index
    %c2 = arith.constant 2 : index
    %c0_16 = arith.constant 0 : index
    %c0_17 = arith.constant 0 : index
    %9 = vector.load %arg3[%c0_15, %c2, %c0_16, %c0_17] : memref<1x4x4x256xf32, #tpu.memory_space<vmem>>, vector<1x1x4x256xf32>
    %10 = vector.shape_cast %9 : vector<1x1x4x256xf32> to vector<1x4x256xf32>
    %11 = vector.shape_cast %8 : vector<1x4x256xf32> to vector<1x1x4x256xf32>
    tpu.vector_store %arg3[%c0_15, %c2, %c0_16, %c0_17], %11 {strides = array<i32>} : memref<1x4x4x256xf32, #tpu.memory_space<vmem>>, vector<1x1x4x256xf32>,
    %c0_18 = arith.constant 0 : index
    %c0_19 = arith.constant 0 : index
    %c0_20 = arith.constant 0 : index
    %12 = vector.load %arg2[%c0_18, %c0_19, %c0_20] : memref<1x4x256xf32, #tpu.memory_space<vmem>>, vector<1x4x256xf32>
    %c0_21 = arith.constant 0 : index
    %c3 = arith.constant 3 : index
    %c0_22 = arith.constant 0 : index
    %c0_23 = arith.constant 0 : index
    %13 = vector.load %arg3[%c0_21, %c3, %c0_22, %c0_23] : memref<1x4x4x256xf32, #tpu.memory_space<vmem>>, vector<1x1x4x256xf32>
    %14 = vector.shape_cast %13 : vector<1x1x4x256xf32> to vector<1x4x256xf32>
    %15 = vector.shape_cast %12 : vector<1x4x256xf32> to vector<1x1x4x256xf32>
    tpu.vector_store %arg3[%c0_21, %c3, %c0_22, %c0_23], %15 {strides = array<i32>} : memref<1x4x4x256xf32, #tpu.memory_space<vmem>>, vector<1x1x4x256xf32>,
    return
  }
  func.func @transform_0(%arg0: i32, %arg1: i32) -> (i32, i32, i32) {
    %c0_i32 = arith.constant 0 : i32
    %c0_i32_0 = arith.constant 0 : i32
    return %arg0, %c0_i32, %arg1 : i32, i32, i32
  }
  func.func @transform_1(%arg0: i32, %arg1: i32) -> (i32, i32, i32, i32) {
    %c0_i32 = arith.constant 0 : i32
    %c0_i32_0 = arith.constant 0 : i32
    %c0_i32_1 = arith.constant 0 : i32
    return %arg0, %c0_i32, %c0_i32_0, %arg1 : i32, i32, i32, i32
  }
}

</mosaic_0001>

<bundles_post_ra>
// kernel: tpu_custom_call.1
= control target key start
LH: loop header
LB: loop body
LE: loop exit
PB: predicated region body
PF: predicated region fallthrough
CT: control target
= control target key end

     0   :  { %6 = vsyncpa [#allocation3], 0  ;;  %s602_s0 = inlined_call_operand.hbm [shape: f32[2,4,256], index: 0, kind: input, shape index: {}]   ;;  %s603_s1 = inlined_call_operand.hbm [shape: f32[2,4,4,256], index: 1, kind: output, shape index: {}]  }
   0x1   :  { %8 = vsyncpa [#allocation3 + $0x1], 0 }
   0x2   :  { %9 = vsyncpa [#allocation4], 0 }
   0x3   :  { %11 = vsyncpa [#allocation4 + $0x1], 0  ;;  %s481_s6 = smov 0   ;;  %s483_s7 = smov 0  }
   0x4   :  { %s485_s8 = smov 0   ;;  %s487_s9 = smov 0  }
   0x5   :  { %s489_s10 = smov 0   ;;  %s491_s11 = smov 0  }
   0x6 LB: > { %s271_s12 = sadd.s32 4294967295, %s467_s11   ;;  %s272_s13 = sadd.s32 4294967294, %s467_s11   ;;  %s467_s11 = sphi %s491_s11, %s17_s11   ;;  %s463_s10 = sphi %s489_s10, %s612_s10   ;;  %s459_s9 = sphi %s487_s9, %s611_s9   ;;  %s455_s8 = sphi %s485_s8, %s610_s8   ;;  %s451_s7 = sphi %s483_s7, %s609_s7   ;;  %s447_s6 = sphi %s481_s6, %s608_s6  }
   0x7   : > { %s29_s14 = sadd.s32 1, %s463_s10  ;;  %s38_s15 = sadd.s32 1, %s455_s8 }
   0x8   : > { %p31_p0 = scmp.ge.s32.totalorder %s29_s14, 2  ;;  %p45_p1 = scmp.ne.s32.totalorder %s455_s8, %s451_s7 }
   0x9   : > { %p46_p2 = scmp.eq.s32.totalorder %s467_s11, 0  ;;  %p51_p3 = scmp.ne.s32.totalorder %s451_s7, %s447_s6 }
   0xa   : > { %s614_s14 = smov (%p31_p0, %s29_s14), 0  ;;  %p52_p5 = scmp.eq.s32.totalorder %s271_s12, 0 }
   0xb   : > { %p522_p4 = por %p46_p2, %p45_p1  ;;  %s33_s17 = ssub.s32 %s463_s10, %s614_s14 }
   0xc   : > { %p77_p6 = scmp.eq.s32.totalorder %s271_s12, 1  ;;  %p36_p7 = scmp.eq.s32.totalorder %s33_s17, 0 }
   0xd   : > { %p528_p8 = por %p52_p5, %p51_p3  ;;  %p83_p10 = scmp.eq.s32.totalorder %s272_s13, 1 }
   0xe   : > { %p532_p9 = por %p77_p6, %p45_p1  ;;  %p274_p12 = scmp.ge.s32.totalorder %s467_s11, 2 }
   0xf   : > { %s537_s20 = scalar_select %p36_p7, %s455_s8, %s38_s15  }
  0x10   : > { %p539_p11 = por %p83_p10, %p51_p3  ;;  %p303_p13 = scmp.lt.s32.totalorder %s467_s11, 2 }
  0x11   : > { %s103_s22 = sand.u32 1, %s455_s8   ;;  %s289_s24 = sshll.u32 %s463_s10, 3 }
  0x12   : > { %s275_s23 = sshll.u32 %s103_s22, 3  ;;  %s114_s27 = scalar_lea.hbm %s602_s0, %s289_s24 }
  0x13   : > { %s107_s28 = scalar_lea.vmem [#allocation2], %s275_s23  ;;  %s116_s30 = sshll.u32 %s114_s27, 4  ;;  %s117_s30 = int_to_ptr.hbm [resolvable:$true] %s116_s30 }
  0x14   : > { %s118_s29 = sshll.u32 %s107_s28, 4  ;;  %p296_p0 = pnand %p303_p13, %p522_p4  ;;  %s119_s29 = int_to_ptr.vmem [resolvable:$true] %s118_s29 }
  0x15   : > { %p278_p1 = scmp.ge.s32.totalorder %s467_s11, 1  ;;  %p123_p2 = scmp.lt.s32.totalorder %s467_s11, 3 }
  0x16   : > { %s104_s2 = scalar_lea.sflag [#allocation3], %s103_s22 }
  0x17   : > { %298 = dma.hbm_to_vmem [thread:$0]  (!%p296_p0), %s117_s30, 128, %s119_s29, %s104_s2  }
  0x18   : > { %p124_p3 = pnand %p278_p1, %p123_p2 }
  0x19   : > { %s555_s3 = sand.u32 (!%p124_p3), 1, %s451_s7  }
  0x1a   : > { %127 = sbr.rel (%p124_p3) target bundleno = 48 (0x30), region = 24  ;;  %s279_s4 = sshll.u32 (!%p124_p3), %s555_s3, 3 }
  0x1b   : > { %s130_s5 = scalar_lea.sflag (!%p124_p3), [#allocation3], %s555_s3  ;;  %s133_s12 = scalar_lea.vmem (!%p124_p3), [#allocation2], %s279_s4 }
  0x1f   : > { %438 = dma.done.wait (%p528_p8), %s130_s5, 128  }
  0x20   : > { %440 = vsyncadd (%p528_p8), %s130_s5, 4294967168  ;;  %s280_s13 = sshll.u32 %s555_s3, 5  ;;  %s290_s15 = sshll.u32 %s459_s9, 5  ;;  %v155_v0 = vld [vmem:[%s133_s12] sm:$0xff] }
  0x21   : > { %s180_s22 = scalar_lea.hbm %s603_s1, %s290_s15  ;;  %s152_s23 = scalar_lea.vmem [#allocation5], %s280_s13 }
  0x22   : > { %s181_s24 = sshll.u32 %s152_s23, 4  ;;  %s183_s25 = sshll.u32 %s180_s22, 4  ;;  %156 = vst [vmem:[%s152_s23] sm:$0xff] %v155_v0  ;;  %s182_s24 = int_to_ptr.vmem [resolvable:$true] %s181_s24  ;;  %s184_s25 = int_to_ptr.hbm [resolvable:$true] %s183_s25 }
  0x23   : > { %281 = vst [vmem:[%s152_s23 + $0x8] sm:$0xff] %v155_v0  ;;  %s167_s18 = scalar_lea.sflag [#allocation4], %s555_s3  ;;  %s399_s26 = sshra.s32 %s184_s25, 4  ;;  %s400_s26 = int_to_ptr.hbm [resolvable:$true] %s399_s26 }
  0x24   : > { %282 = vst [vmem:[%s152_s23 + $0x10] sm:$0xff] %v155_v0  ;;  %s401_s27 = scalar_lea.hbm %s400_s26, 32  ;;  %s405_s29 = scalar_lea.hbm %s603_s1, 64 }
  0x25   : > { %283 = vst [vmem:[%s152_s23 + $0x18] sm:$0xff] %v155_v0  ;;  %p402_p4 = scmp.ne.s32.totalorder %s400_s26, %s401_s27  ;;  %p406_p7 = scmp.lt.s32.totalorder %s400_s26, %s603_s1 }
  0x26   : > { %p407_p8 = scmp.lt.s32.totalorder %s405_s29, %s401_s27 }
  0x27   : > { %p403_p5 = pnand %p402_p4, %p532_p9 }
  0x28   : > { %p408_p10 = por %p407_p8, %p406_p7 }
  0x29   : > { %p404_p6 = pneg %p403_p5 }
  0x2b   : > { %p409_p13 = pnand %p408_p10, %p404_p6 }
  0x2d   : > { %412 = shalt.err (!%p409_p13)
}
  0x2e   : > { %s469_s3 = smov 128   ;;  %s470_s4 = smov 8  }
  0x2f   : > { %293 = dma.vmem_to_hbm [thread:$0]  (%p532_p9), %s182_s24, 512, %s184_s25, %s167_s18, %s469_s3, %s469_s3, %s470_s4  }
  0x30 PF: > { %s198_s5 = sand.u32 1, %s447_s6   ;;  %p300_p0 = pnand %p274_p12, %p539_p11 }
  0x31   : > { %s199_s12 = scalar_lea.sflag [#allocation4], %s198_s5 }
  0x32   : > { %p301_p1 = pneg %p300_p0 }
  0x34   : > { %442 = dma.done.wait (%p301_p1), %s199_s12, 512  }
  0x35   : > { %444 = vsyncadd (%p301_p1), %s199_s12, 4294966784  ;;  %s17_s11 = sadd.s32 1, %s467_s11   ;;  %s608_s6 = smov %s451_s7 }
  0x36   : > { %p14_p2 = scmp.ge.s32.totalorder %s17_s11, 4   ;;  %s609_s7 = smov %s455_s8 }
  0x37   : > { %s610_s8 = smov %s537_s20  ;;  %s611_s9 = smov %s463_s10 }
  0x38   : > { %s612_s10 = smov %s614_s14  ;;  %16 = sbr.rel (!%p14_p2) target bundleno = 6 (0x6), region = 72 }
  0x3d   :  { %205 = vsyncpa [#allocation3], 1 }
  0x3e   :  { %207 = vsyncpa [#allocation3 + $0x1], 1 }
  0x3f   :  { %208 = vsyncpa [#allocation4], 1 }
  0x40   :  { %210 = vsyncpa [#allocation4 + $0x1], 1 }

</bundles_post_ra>
